<compile_context>
chip_gen: v5e
topology: v5e:2x2
jax: 0.10.0
libtpu: 0.0.40
codegen_flags: <defaults>
</compile_context>

<pallas_src>
import functools
import math

import jax
import jax.numpy as jnp
from jax.experimental import pallas as pl
from jax.experimental.pallas import tpu as pltpu

_LANES = 128        # vreg lane width
# Total VMEM devoted to live pipeline blocks: (#streams) x (2 buffers) x block.
# 24 MiB -> ~4 MiB blocks on the masked (3-stream) path, ~6 MiB on the
# mask-free (2-stream) path.
_BLOCK_VMEM_BUDGET = 24 * 1024 * 1024
_VMEM_LIMIT_BYTES = 40 * 1024 * 1024   # safe on v5e/v6e (128 MiB) and v7x (64 MiB)


def _round_up(a, b):
    return ((a + b - 1) // b) * b


# ----------------------------- kernels --------------------------------------


def _softmax_rows(x, cols):
    """Stable softmax over independent length-`cols` segments.

    `x` is (tr, lanes) f32 with lanes == pack * cols: each 128-lane row holds
    `pack` independent softmax rows (lane-dense layout).
    """
    tr, lanes = x.shape
    pack = lanes // cols
    if pack > 1:
        # TODO(synk): verify (pl.lower_as_mlir) that Mosaic lowers this
        # lane-split reshape without a VMEM retile copy; if it does retile,
        # replace with a pltpu.roll-based segmented max/sum (XLU slot).
        x = x.reshape(tr, pack, cols)
    m = jnp.max(x, axis=-1, keepdims=True)
    e = jnp.exp(x - m)
    s = jnp.sum(e, axis=-1, keepdims=True)
    out = e / s        # exact divide: rows sum to 1 (approx reciprocal failed 1e-3 parity)
    if pack > 1:
        out = out.reshape(tr, lanes)
    return out


def _softmax_kernel(x_ref, o_ref, *, cols):
    # No-mask variant: only x is streamed.
    x = x_ref[...].astype(jnp.float32)
    o_ref[...] = _softmax_rows(x, cols).astype(o_ref.dtype)


def _softmax_kernel_bool_mask(x_ref, m_ref, o_ref, *, cols, fill):
    # Positions where mask is False are *replaced* by finfo(x.dtype).min, so a
    # fully-masked row yields a uniform distribution instead of NaN.
    keep = m_ref[...] != 0                       # int8 mask (1 B/elem in HBM)
    x = jnp.where(keep, x_ref[...].astype(jnp.float32), fill)
    o_ref[...] = _softmax_rows(x, cols).astype(o_ref.dtype)


def _softmax_kernel_add_mask(x_ref, m_ref, o_ref, *, cols):
    x = x_ref[...].astype(jnp.float32) + m_ref[...].astype(jnp.float32)
    o_ref[...] = _softmax_rows(x, cols).astype(o_ref.dtype)


# ----------------------------- wrapper ---------------------------------------


def _pick_row_tile(rows, lanes, stream_bytes, row_align):
    """Row tile: budget-sized, sublane-aligned, and >=2 grid steps if possible."""
    bytes_per_row = 2 * lanes * stream_bytes          # x2: double-buffering
    budget_rows = max(row_align, _BLOCK_VMEM_BUDGET // bytes_per_row)
    tr = min(budget_rows, rows)
    if tr < rows:
        # Tiled: block row-dim must be a multiple of the sublane alignment.
        return max(row_align, (tr // row_align) * row_align)
    # A single block would cover all rows: split so the grid has >= 2 steps and
    # both v7x TensorCores get work (no-op on the single-TC v5e/v6e).
    if rows > row_align:
        half = _round_up(pl.cdiv(rows, 2), row_align)
        if half < rows:
            return half
    return rows


def _call_softmax(x2, m2, mask_mode, fill, cols):
    """Run the pallas softmax on a 2-D (rows, lanes) array, lanes = pack*cols."""
    rows, lanes = x2.shape

    stream_bytes = 2 * x2.dtype.itemsize              # x in + out
    row_align = 32 // x2.dtype.itemsize               # f32 -> 8, bf16 -> 16
    if m2 is not None:
        stream_bytes += m2.dtype.itemsize
        row_align = max(row_align, 32 // m2.dtype.itemsize)   # int8 -> 32

    tr = _pick_row_tile(rows, lanes, stream_bytes, row_align)
    grid = (pl.cdiv(rows, tr),)          # ragged tail handled by Pallas (masked OOB store)
    spec = pl.BlockSpec((tr, lanes), lambda i: (i, 0))

    if mask_mode is None:
        kernel = functools.partial(_softmax_kernel, cols=cols)
        in_specs, args = [spec], (x2,)
    elif mask_mode == "bool":
        kernel = functools.partial(_softmax_kernel_bool_mask, cols=cols, fill=fill)
        in_specs, args = [spec, spec], (x2, m2)
    else:  # additive float mask
        kernel = functools.partial(_softmax_kernel_add_mask, cols=cols)
        in_specs, args = [spec, spec], (x2, m2)

    return pl.pallas_call(
        kernel,
        out_shape=jax.ShapeDtypeStruct((rows, lanes), x2.dtype),
        grid_spec=pltpu.PrefetchScalarGridSpec(
            num_scalar_prefetch=0,
            grid=grid,
            in_specs=in_specs,
            out_specs=spec,
        ),
        compiler_params=pltpu.CompilerParams(
            dimension_semantics=("parallel",),
            vmem_limit_bytes=_VMEM_LIMIT_BYTES),
    )(*args)


def _pad2(a, rows_to, cols_to, row_val, col_val):
    rows, cols = a.shape
    if cols_to > cols:
        a = jnp.pad(a, ((0, 0), (0, cols_to - cols)), constant_values=col_val)
    if rows_to > rows:
        a = jnp.pad(a, ((0, rows_to - rows), (0, 0)), constant_values=row_val)
    return a


def pallas_softmax(x, dim=-1, mask=None):
    """Softmax over `dim`, matching the PyTorch `softmax(x, dim, mask)` helper.

    bool mask: False positions are replaced with finfo(x.dtype).min before the
    softmax (the intended reading of torch's `mask.type == torch.bool` branch);
    non-bool mask: added to x before the softmax.
    """
    x = jnp.asarray(x)
    if not jnp.issubdtype(x.dtype, jnp.floating):
        x = x.astype(jnp.float32)
    ndim = x.ndim
    dim = dim % ndim

    # Move the softmax axis to last (identity for the common dim=-1 case).
    # TODO(synk): for dim != last, reduce over the sublane axis in-kernel
    # instead of paying this wrapper-side HBM transpose round trip.
    perm = [i for i in range(ndim) if i != dim] + [dim]
    identity = perm == list(range(ndim))
    inv_perm = [perm.index(i) for i in range(ndim)]
    xt = x if identity else jnp.transpose(x, perm)
    moved_shape = xt.shape
    cols = moved_shape[-1]
    rows = math.prod(moved_shape[:-1]) if ndim > 1 else 1
    x2 = xt.reshape(rows, cols)

    mask_mode, fill, m2 = None, None, None
    if mask is not None:
        mask = jnp.asarray(mask)
        if mask.dtype == jnp.bool_:
            mask_mode = "bool"
            fill = float(jnp.finfo(x.dtype).min)
            # int8 mask: 1 B/elem HBM traffic; the where() runs in-kernel.
            # TODO(synk): stream the compact pre-broadcast mask with its own
            # BlockSpec/index_map (block 0 along broadcast dims) instead of
            # materializing the broadcast in HBM.
            mfull = jnp.broadcast_to(mask, x.shape).astype(jnp.int8)
        else:
            mask_mode = "add"
            mfull = jnp.broadcast_to(mask.astype(x.dtype), x.shape)
        mt = mfull if identity else jnp.transpose(mfull, perm)
        m2 = mt.reshape(rows, cols)

    # ---- lane-dense packing / padding ---------------------------------------
    if cols <= _LANES:
        cols_p = int(pl.next_power_of_2(cols))   # divides 128
        pack = _LANES // cols_p
    else:
        cols_p = _round_up(cols, _LANES)
        pack = 1
    rows_pad = _round_up(rows, pack)

    neg_inf = float("-inf")   # exp(-inf - m) == 0: padded cols never contribute
    x2 = _pad2(x2, rows_pad, cols_p, row_val=0.0, col_val=neg_inf)
    if m2 is not None:
        if mask_mode == "bool":
            m2 = _pad2(m2, rows_pad, cols_p, row_val=1, col_val=1)
        else:
            m2 = _pad2(m2, rows_pad, cols_p, row_val=0.0, col_val=0.0)

    lanes = pack * cols_p
    n_rows = rows_pad // pack
    xp = x2.reshape(n_rows, lanes)
    mp = None if m2 is None else m2.reshape(n_rows, lanes)

    # TODO(synk): add a column-tiled online-softmax variant (flash-style running
    # max/sum in VMEM scratch, finalize with pl.when) for very large cols so a
    # whole row does not have to fit in one block.
    if pack > 1:
        try:
            out = _call_softmax(xp, mp, mask_mode, fill, cols_p)
        except Exception:
            # Safety net: if this toolchain's Mosaic rejects the in-kernel
            # (tr, 128) -> (tr, pack, cols) lane-split reshape, fall back to the
            # un-packed layout (identical results, just less lane-dense).
            out = _call_softmax(x2, m2, mask_mode, fill, cols_p)
            out = out.reshape(n_rows, lanes)
    else:
        out = _call_softmax(xp, mp, mask_mode, fill, cols_p)

    out = out.reshape(rows_pad, cols_p)[:rows, :cols].reshape(moved_shape)
    return out if identity else jnp.transpose(out, inv_perm)


class Softmax:
    """Pallas equivalent of the PyTorch Softmax module."""

    def __init__(self, dim):
        self.dim = dim

    def __call__(self, x, mask=None):
        return pallas_softmax(x, dim=self.dim, mask=mask)


# ----------------------------- reference & test ------------------------------


def reference_softmax(x, dim=-1, mask=None):
    x = jnp.asarray(x)
    if mask is not None:
        mask = jnp.asarray(mask)
        if mask.dtype == jnp.bool_:
            x = jnp.where(jnp.broadcast_to(mask, x.shape), x,
                          jnp.finfo(x.dtype).min)
        else:
            x = x + jnp.broadcast_to(mask.astype(x.dtype), x.shape)
    return jax.nn.softmax(x, axis=dim)


if __name__ == "__main__":
    key = jax.random.PRNGKey(0)
    k_x, k_m = jax.random.split(key)

    # NCHW input, softmax over the last dim (matches Softmax(dim=-1)).
    x = jax.random.normal(k_x, (2, 4, 16, 16), dtype=jnp.float32)
    # Boolean mask broadcastable over x; force one fully-masked row to exercise
    # the replace-with-min semantics (reference yields a uniform row there).
    mask = jax.random.bernoulli(k_m, p=0.7, shape=(2, 1, 16, 16))
    mask = mask.at[0, 0, 0, :].set(False)

    module = Softmax(dim=-1)

    # No-mask path (single-input kernel, 2-step grid for v7x megacore).
    out_plain = module(x)
    jax.block_until_ready(out_plain)
    ref_plain = reference_softmax(x, dim=-1)
    assert jnp.allclose(out_plain, ref_plain, atol=1e-3, rtol=1e-3), "plain"

    # Bool-mask path (int8 mask stream, in-kernel where).
    out_masked = module(x, mask=mask)
    jax.block_until_ready(out_masked)
    ref_masked = reference_softmax(x, dim=-1, mask=mask)
    assert jnp.allclose(out_masked, ref_masked, atol=1e-3, rtol=1e-3), "bool mask"

    # Additive (float) mask path.
    add_mask = jnp.where(mask, 0.0, -1e9).astype(jnp.float32)
    out_add = module(x, mask=add_mask)
    jax.block_until_ready(out_add)
    ref_add = reference_softmax(x, dim=-1, mask=add_mask)
    assert jnp.allclose(out_add, ref_add, atol=1e-3, rtol=1e-3), "add mask"

    # Non-last-dim softmax (dim=1, i.e. over channels; wrapper-side transpose).
    out_dim1 = pallas_softmax(x, dim=1)
    jax.block_until_ready(out_dim1)
    ref_dim1 = reference_softmax(x, dim=1)
    assert jnp.allclose(out_dim1, ref_dim1, atol=1e-3, rtol=1e-3), "dim=1"

    print("KERNEL_OK")
</pallas_src>

<mosaic_0001>
module attributes {stable_mosaic.version = 11 : i64} {
  func.func @_softmax_kernel(%arg0: i32, %arg1: memref<8x128xf32, #tpu.memory_space<vmem>>, %arg2: memref<8x128xf32, #tpu.memory_space<vmem>>) attributes {dimension_semantics = [#tpu.dimension_semantics<parallel>], iteration_bounds = array<i64: 2>, scalar_prefetch = 0 : i64, scratch_operands = 0 : i64, tpu.core_type = #tpu.core_type<tc>, window_params = [{transform_indices = @transform_0, window_bounds = array<i64: 8, 128>}, {transform_indices = @transform_1, window_bounds = array<i64: 8, 128>}]} {
    %c0 = arith.constant 0 : index
    %c0_0 = arith.constant 0 : index
    %0 = vector.load %arg1[%c0, %c0_0] : memref<8x128xf32, #tpu.memory_space<vmem>>, vector<8x128xf32>
    %1 = vector.shape_cast %0 : vector<8x128xf32> to vector<8x8x16xf32>
    %cst = arith.constant dense<0xFF800000> : vector<8x8xf32>
    %2 = vector.multi_reduction <maximumf>, %1, %cst [2] : vector<8x8x16xf32> to vector<8x8xf32>
    %3 = vector.shape_cast %2 : vector<8x8xf32> to vector<8x8x1xf32>
    %4 = vector.broadcast %3 : vector<8x8x1xf32> to vector<8x8x16xf32>
    %5 = arith.subf %1, %4 : vector<8x8x16xf32>
    %6 = math.exp %5 : vector<8x8x16xf32>
    %cst_1 = arith.constant dense<0.000000e+00> : vector<8x8xf32>
    %7 = vector.multi_reduction <add>, %6, %cst_1 [2] : vector<8x8x16xf32> to vector<8x8xf32>
    %8 = vector.shape_cast %7 : vector<8x8xf32> to vector<8x8x1xf32>
    %9 = vector.broadcast %8 : vector<8x8x1xf32> to vector<8x8x16xf32>
    %10 = arith.divf %6, %9 : vector<8x8x16xf32>
    %11 = vector.shape_cast %10 : vector<8x8x16xf32> to vector<8x128xf32>
    %c0_2 = arith.constant 0 : index
    %c0_3 = arith.constant 0 : index
    %12 = vector.load %arg2[%c0_2, %c0_3] : memref<8x128xf32, #tpu.memory_space<vmem>>, vector<8x128xf32>
    tpu.vector_store %arg2[%c0_2, %c0_3], %11 {strides = array<i32>} : memref<8x128xf32, #tpu.memory_space<vmem>>, vector<8x128xf32>,
    return
  }
  func.func @transform_0(%arg0: i32) -> (i32, i32) {
    %c0_i32 = arith.constant 0 : i32
    %c0_i32_0 = arith.constant 0 : i32
    return %arg0, %c0_i32 : i32, i32
  }
  func.func @transform_1(%arg0: i32) -> (i32, i32) {
    %c0_i32 = arith.constant 0 : i32
    %c0_i32_0 = arith.constant 0 : i32
    return %arg0, %c0_i32 : i32, i32
  }
}

module attributes {stable_mosaic.version = 11 : i64} {
  func.func @_softmax_kernel(%arg0: i32, %arg1: memref<64x16xf32, #tpu.memory_space<vmem>>, %arg2: memref<64x16xf32, #tpu.memory_space<vmem>>) attributes {dimension_semantics = [#tpu.dimension_semantics<parallel>], iteration_bounds = array<i64: 2>, scalar_prefetch = 0 : i64, scratch_operands = 0 : i64, tpu.core_type = #tpu.core_type<tc>, window_params = [{transform_indices = @transform_0, window_bounds = array<i64: 64, 16>}, {transform_indices = @transform_1, window_bounds = array<i64: 64, 16>}]} {
    %c0 = arith.constant 0 : index
    %c0_0 = arith.constant 0 : index
    %0 = vector.load %arg1[%c0, %c0_0] : memref<64x16xf32, #tpu.memory_space<vmem>>, vector<64x16xf32>
    %cst = arith.constant dense<0xFF800000> : vector<64xf32>
    %1 = vector.multi_reduction <maximumf>, %0, %cst [1] : vector<64x16xf32> to vector<64xf32>
    %2 = vector.shape_cast %1 : vector<64xf32> to vector<64x1xf32>
    %3 = vector.broadcast %2 : vector<64x1xf32> to vector<64x16xf32>
    %4 = arith.subf %0, %3 : vector<64x16xf32>
    %5 = math.exp %4 : vector<64x16xf32>
    %cst_1 = arith.constant dense<0.000000e+00> : vector<64xf32>
    %6 = vector.multi_reduction <add>, %5, %cst_1 [1] : vector<64x16xf32> to vector<64xf32>
    %7 = vector.shape_cast %6 : vector<64xf32> to vector<64x1xf32>
    %8 = vector.broadcast %7 : vector<64x1xf32> to vector<64x16xf32>
    %9 = arith.divf %5, %8 : vector<64x16xf32>
    %c0_2 = arith.constant 0 : index
    %c0_3 = arith.constant 0 : index
    %10 = vector.load %arg2[%c0_2, %c0_3] : memref<64x16xf32, #tpu.memory_space<vmem>>, vector<64x16xf32>
    tpu.vector_store %arg2[%c0_2, %c0_3], %9 {strides = array<i32>} : memref<64x16xf32, #tpu.memory_space<vmem>>, vector<64x16xf32>,
    return
  }
  func.func @transform_0(%arg0: i32) -> (i32, i32) {
    %c0_i32 = arith.constant 0 : i32
    %c0_i32_0 = arith.constant 0 : i32
    return %arg0, %c0_i32 : i32, i32
  }
  func.func @transform_1(%arg0: i32) -> (i32, i32) {
    %c0_i32 = arith.constant 0 : i32
    %c0_i32_0 = arith.constant 0 : i32
    return %arg0, %c0_i32 : i32, i32
  }
}

</mosaic_0001>

<bundles_post_ra>
// kernel: tpu_custom_call.1
= control target key start
LH: loop header
LB: loop body
LE: loop exit
PB: predicated region body
PF: predicated region fallthrough
CT: control target
= control target key end

     0   :  { %6 = vsyncpa [#allocation3], 0  ;;  %s1296_s0 = inlined_call_operand.hbm [shape: f32[16,128], index: 0, kind: input, shape index: {}]   ;;  %s1297_s1 = inlined_call_operand.hbm [shape: f32[16,128], index: 1, kind: output, shape index: {}]  }
   0x1   :  { %8 = vsyncpa [#allocation3 + $0x1], 0 }
   0x2   :  { %9 = vsyncpa [#allocation4], 0 }
   0x3   :  { %11 = vsyncpa [#allocation4 + $0x1], 0  ;;  %s919_s6 = smov 0   ;;  %s921_s7 = smov 0  }
   0x4   :  { %s923_s8 = smov 0   ;;  %s925_s9 = smov 0  }
   0x5 LB: > { %s940_s10 = sadd.s32 4294967295, %s898_s9   ;;  %s703_s11 = sadd.s32 4294967294, %s898_s9   ;;  %s898_s9 = sphi %s925_s9, %s1319_s9   ;;  %s894_s8 = sphi %s923_s8, %s1318_s8   ;;  %s890_s7 = sphi %s921_s7, %s1317_s7   ;;  %s886_s6 = sphi %s919_s6, %s1316_s6  }
   0x6   : > { %s944_s12 = sadd.s32 1, %s898_s9   ;;  %s24_s13 = sadd.s32 1, %s894_s8 }
   0x7   : > { %s21_s14 = ssub.s32 %s898_s9, %s944_s12  ;;  %p31_p0 = scmp.ne.s32.totalorder %s894_s8, %s890_s7 }
   0x8   : > { %p22_p1 = scmp.eq.s32.totalorder %s21_s14, 0  ;;  %p32_p2 = scmp.eq.s32.totalorder %s898_s9, 0 }
   0x9   : > { %p37_p3 = scmp.ne.s32.totalorder %s890_s7, %s886_s6  ;;  %p38_p4 = scmp.eq.s32.totalorder %s940_s10, 0 }
   0xa   : > { %s956_s15 = scalar_select %p22_p1, %s894_s8, %s24_s13  }
   0xb   : > { %p958_p5 = por %p32_p2, %p31_p0  ;;  %p962_p6 = por %p38_p4, %p37_p3 }
   0xc   : > { %p61_p7 = scmp.eq.s32.totalorder %s940_s10, 1  ;;  %p67_p8 = scmp.eq.s32.totalorder %s703_s11, 1 }
   0xd   : > { %p727_p10 = scmp.lt.s32.totalorder %s898_s9, 2  ;;  %s87_s20 = sand.u32 1, %s894_s8  }
   0xe   : > { %p969_p11 = por %p61_p7, %p31_p0  ;;  %p973_p12 = por %p67_p8, %p37_p3 }
   0xf   : > { %s707_s21 = sshll.u32 %s898_s9, 3  ;;  %s706_s22 = sshll.u32 %s87_s20, 3 }
  0x10   : > { %s95_s25 = scalar_lea.hbm %s1296_s0, %s707_s21  ;;  %s91_s27 = scalar_lea.vmem [#allocation2], %s706_s22 }
  0x11   : > { %s97_s26 = sshll.u32 %s95_s25, 4  ;;  %s99_s28 = sshll.u32 %s91_s27, 4  ;;  %s98_s26 = int_to_ptr.hbm [resolvable:$true] %s97_s26  ;;  %s100_s28 = int_to_ptr.vmem [resolvable:$true] %s99_s28 }
  0x12   : > { %p984_p13 = pnand %p727_p10, %p958_p5  ;;  %p708_p0 = scmp.ge.s32.totalorder %s898_s9, 1 }
  0x13   : > { %p104_p1 = scmp.lt.s32.totalorder %s898_s9, 3  ;;  %s88_s30 = scalar_lea.sflag [#allocation3], %s87_s20 }
  0x14   : > { %s802_s2 = sshra.s32 %s98_s26, 4  ;;  %p806_p3 = pneg %p984_p13  ;;  %s803_s2 = int_to_ptr.hbm [resolvable:$true] %s802_s2 }
  0x15   : > { %s804_s3 = scalar_lea.hbm %s803_s2, 8  ;;  %s809_s11 = scalar_lea.hbm %s1296_s0, 16 }
  0x16   : > { %p805_p2 = scmp.ne.s32.totalorder %s803_s2, %s804_s3  ;;  %p810_p5 = scmp.lt.s32.totalorder %s803_s2, %s1296_s0 }
  0x17   : > { %p811_p8 = scmp.lt.s32.totalorder %s809_s11, %s804_s3 }
  0x18   : > { %p807_p4 = pnand %p806_p3, %p805_p2 }
  0x19   : > { %p812_p10 = por %p811_p8, %p810_p5 }
  0x1a   : > { %p808_p7 = pneg %p807_p4 }
  0x1c   : > { %p813_p9 = pnand %p812_p10, %p808_p7 }
  0x1e   : > { %816 = shalt.err (!%p813_p9)
}
  0x1f   : > { %722 = dma.hbm_to_vmem [thread:$0]  (!%p984_p13), %s98_s26, 128, %s100_s28, %s88_s30  }
  0x20   : > { %p105_p2 = pnand %p708_p0, %p104_p1 }
  0x21   : > { %s1005_s16 = sand.u32 (!%p105_p2), 1, %s890_s7  }
  0x22   : > { %108 = sbr.rel (%p105_p2) target bundleno = 612 (0x264), region = 24  ;;  %s709_s20 = sshll.u32 (!%p105_p2), %s1005_s16, 3 }
  0x23   : > { %s111_s21 = scalar_lea.sflag (!%p105_p2), [#allocation3], %s1005_s16  ;;  %s114_s22 = scalar_lea.vmem (!%p105_p2), [#allocation2], %s709_s20 }
  0x27   : > { %877 = dma.done.wait (%p962_p6), %s111_s21, 128  }
  0x28   : > { %879 = vsyncadd (%p962_p6), %s111_s21, 4294967168  ;;  %v134_v0 = vld [vmem:[%s114_s22] sm:$0xff]  ;;  %s900_s23 = smov 80   ;;  %s901_s24 = smov 96   ;;  %v907_v1 = vmov 1983009808  }
  0x29   : > { %142 = vrot.lane.b32.xlu1 %v134_v0, %s900_s23  ;;  %139 = vrot.lane.b32.xlu0 %v134_v0, %s901_s24  ;;  %s902_s25 = smov 112   ;;  %s903_s26 = smov 32   ;;  %v163_v2 = vunpack.c.l.s4 %v907_v1  ;;  %v160_v3 = vrot.slane %v134_v0, 4  ;;  %vm158_vm0 = vcmask 1047556   ;;  %v908_v16 = vmov 1934713408  }
  0x2a   : > { %136 = vrot.lane.b32.xlu2 %v134_v0, %s902_s25  ;;  %s904_s27 = smov 64   ;;  %s905_s28 = smov 48   ;;  %v211_v17 = vunpack.c.l.s4 %v908_v16  ;;  %vm270_vm1 = vcmask 130048  }
  0x2b   : > { %s906_s17 = smov 16   ;;  %v1022_v7 = vunpack.c.0.s8 %v163_v2  ;;  %s712_s29 = sshll.u32 %s940_s10, 3 }
  0x2c   : > { %v1034_v30 = vunpack.c.0.s8 %v211_v17  ;;  %s628_s3 = scalar_lea.hbm %s1297_s1, %s712_s29  ;;  %s133_s4 = scalar_lea.vmem [#allocation5], %s709_s20 }
  0x2d   : > { %s630_s5 = sshll.u32 %s133_s4, 4  ;;  %s632_s11 = sshll.u32 %s628_s3, 4  ;;  %s631_s5 = int_to_ptr.vmem [resolvable:$true] %s630_s5  ;;  %s633_s11 = int_to_ptr.hbm [resolvable:$true] %s632_s11 }
  0x2e   : > { %s618_s10 = scalar_lea.sflag [#allocation4], %s1005_s16  ;;  %s846_s13 = sshra.s32 %s633_s11, 4  ;;  %s847_s13 = int_to_ptr.hbm [resolvable:$true] %s846_s13 }
  0x2f   : > { %s848_s14 = scalar_lea.hbm %s847_s13, 8  ;;  %s852_s22 = scalar_lea.hbm %s1297_s1, 16 }
  0x30   : > { %p849_p6 = scmp.ne.s32.totalorder %s847_s13, %s848_s14  ;;  %p853_p0 = scmp.lt.s32.totalorder %s847_s13, %s1297_s1 }
  0x31   : > { %151 = vrot.lane.b32.xlu1 %v134_v0, %s903_s26  ;;  %145 = vrot.lane.b32.xlu0 %v134_v0, %s904_s27  ;;  %p854_p1 = scmp.lt.s32.totalorder %s852_s22, %s848_s14 }
  0x32   : > { %148 = vrot.lane.b32.xlu2 %v134_v0, %s905_s28  ;;  %p850_p9 = pnand %p849_p6, %p969_p11 }
  0x33   : > { %p855_p3 = por %p854_p1, %p853_p0 }
  0x34   : > { %p851_p13 = pneg %p850_p9 }
  0x36   : > { %p856_p4 = pnand %p855_p3, %p851_p13 }
  0x39   : > { %154 = vrot.lane.b32.xlu0 %v134_v0, %s906_s17 }
  0x84   : > { %v137_v6 = vpop.permute.xlu2 %136 }
  0x85   : > { %v172_v10 = vrot.slane %v137_v6, 4 }
  0x8c   : > { %v149_v24 = vpop.permute.xlu2 %148 }
  0x8d   : > { %v196_v29 = vrot.slane %v149_v24, 4 }
  0x9b   : > { %v143_v4 = vpop.permute.xlu1 %142  ;;  %v140_v5 = vpop.permute.xlu0 %139 }
  0x9c   : > { %v170_v8 = vrot.slane %v143_v4, 4  ;;  %v161_v9 = vsel %vm158_vm0, %v140_v5, %v160_v3  ;;  %v157_v11 = vrot.slane %v140_v5, 4  ;;  %v173_v18 = vsel %vm158_vm0, %v143_v4, %v172_v10 }
  0x9d   : > { %v169_v12 = vperm.slane %v161_v9, %v1022_v7  ;;  %v181_v26 = vperm.slane %v173_v18, %v1022_v7 }
  0x9e   : > { %v171_v13 = vsel %vm158_vm0, %v170_v8, %v137_v6  ;;  %v159_v19 = vsel %vm158_vm0, %v157_v11, %v134_v0 }
  0x9f   : > { %v177_v22 = vperm.slane %v171_v13, %v1022_v7  ;;  %v220_v23 = vrot.slane %v169_v12, 4  ;;  %v165_v27 = vperm.slane %v159_v19, %v1022_v7  ;;  %v218_v43 = vrot.slane %v181_v26, 4 }
  0xa1   : > { %v206_v31 = vrot.slane %v177_v22, 4  ;;  %v221_v33 = vsel %vm158_vm0, %v181_v26, %v220_v23  ;;  %v208_v34 = vrot.slane %v165_v27, 4  ;;  %v219_v59 = vsel %vm158_vm0, %v218_v43, %v169_v12 }
  0xa2   : > { %v229_v39 = vperm.slane %v221_v33, %v1034_v30  ;;  %v225_v6 = vperm.slane %v219_v59, %v1034_v30 }
  0xa3   : > { %v152_v14 = vpop.permute.xlu1 %151  ;;  %v146_v15 = vpop.permute.xlu0 %145  ;;  %v207_v42 = vsel %vm158_vm0, %v206_v31, %v165_v27  ;;  %v209_v48 = vsel %vm158_vm0, %v177_v22, %v208_v34 }
  0xa4   : > { %v182_v20 = vrot.slane %v152_v14, 4  ;;  %v184_v21 = vrot.slane %v146_v15, 4  ;;  %v268_v50 = vrot.slane %v229_v39, 4  ;;  %v213_v51 = vperm.slane %v207_v42, %v1034_v30 }
  0xa5   : > { %v217_v57 = vperm.slane %v209_v48, %v1034_v30  ;;  %v264_v12 = vrot.slane %v225_v6, 4 }
  0xa6   : > { %v185_v25 = vsel %vm158_vm0, %v152_v14, %v184_v21  ;;  %v183_v28 = vsel %vm158_vm0, %v182_v20, %v146_v15  ;;  %v256_v0 = vrot.slane %v213_v51, 4 }
  0xa7   : > { %v193_v32 = vperm.slane %v185_v25, %v1022_v7  ;;  %v189_v35 = vperm.slane %v183_v28, %v1022_v7  ;;  %v260_v4 = vrot.slane %v217_v57, 4 }
  0xa9   : > { %v244_v40 = vrot.slane %v193_v32, 4  ;;  %v232_v45 = vrot.slane %v189_v35, 4 }
  0xab   : > { %v155_v36 = vpop.permute.xlu0 %154 }
  0xac   : > { %v194_v37 = vrot.slane %v155_v36, 4  ;;  %v197_v38 = vsel %vm158_vm0, %v155_v36, %v196_v29 }
  0xad   : > { %v205_v41 = vperm.slane %v197_v38, %v1022_v7 }
  0xae   : > { %v195_v44 = vsel %vm158_vm0, %v194_v37, %v149_v24 }
  0xaf   : > { %v201_v46 = vperm.slane %v195_v44, %v1022_v7  ;;  %v245_v47 = vsel %vm158_vm0, %v205_v41, %v244_v40  ;;  %v242_v53 = vrot.slane %v205_v41, 4 }
  0xb0   : > { %v253_v49 = vperm.slane %v245_v47, %v1034_v30 }
  0xb1   : > { %v230_v52 = vrot.slane %v201_v46, 4  ;;  %v233_v54 = vsel %vm158_vm0, %v201_v46, %v232_v45  ;;  %v243_v2 = vsel %vm158_vm0, %v242_v53, %v193_v32 }
  0xb2   : > { %v269_v55 = vsel %vm158_vm0, %v253_v49, %v268_v50  ;;  %v266_v56 = vrot.slane %v253_v49, 4  ;;  %v241_v58 = vperm.slane %v233_v54, %v1034_v30  ;;  %v249_v10 = vperm.slane %v243_v2, %v1034_v30 }
  0xb3   : > { %v292_v60 = vsel %vm270_vm1, %v269_v55, -inf  ;;  %v231_v61 = vsel %vm158_vm0, %v230_v52, %v189_v35 }
  0xb4   : > { %293 = vmax.xlane.f32.xlu1 %v292_v60  ;;  %v267_v62 = vsel %vm158_vm0, %v266_v56, %v229_v39  ;;  %v237_v63 = vperm.slane %v231_v61, %v1034_v30  ;;  %v258_v5 = vrot.slane %v241_v58, 4  ;;  %v261_v9 = vsel %vm158_vm0, %v241_v58, %v260_v4 }
  0xb5   : > { %v289_v1 = vsel %vm270_vm1, %v267_v62, -inf  ;;  %v280_v13 = vsel %vm270_vm1, %v261_v9, -inf  ;;  %v265_v14 = vsel %vm158_vm0, %v249_v10, %v264_v12  ;;  %v262_v17 = vrot.slane %v249_v10, 4 }
  0xb6   : > { %290 = vmax.xlane.f32.xlu2 %v289_v1  ;;  %v257_v3 = vsel %vm158_vm0, %v237_v63, %v256_v0  ;;  %v259_v11 = vsel %vm158_vm0, %v258_v5, %v217_v57  ;;  %v254_v15 = vrot.slane %v237_v63, 4  ;;  %v286_v18 = vsel %vm270_vm1, %v265_v14, -inf }
  0xb7   : > { %v274_v8 = vsel %vm270_vm1, %v257_v3, -inf  ;;  %v277_v16 = vsel %vm270_vm1, %v259_v11, -inf  ;;  %v263_v20 = vsel %vm158_vm0, %v262_v17, %v225_v6 }
  0xb8   : > { %275 = vmax.xlane.f32.xlu0 %v274_v8  ;;  %v255_v19 = vsel %vm158_vm0, %v254_v15, %v213_v51  ;;  %v283_v22 = vsel %vm270_vm1, %v263_v20, -inf }
  0xb9   : > { %v271_v21 = vsel %vm270_vm1, %v255_v19, -inf }
  0xbc   : > { %281 = vmax.xlane.f32.xlu1 %v280_v13 }
  0xbe   : > { %278 = vmax.xlane.f32.xlu2 %v277_v16 }
  0xc0   : > { %287 = vmax.xlane.f32.xlu0 %v286_v18 }
  0xc4   : > { %272 = vmax.xlane.f32.xlu1 %v271_v21 }
  0xc6   : > { %284 = vmax.xlane.f32.xlu2 %v283_v22 }
 0x127   : > { %v294_v23 = vpop.xlane.xlu1 %293 }
 0x128   : > { %v302_v24 = vsub.f32 %v269_v55, %v294_v23 }
 0x129   : > { %v291_v25 = vpop.xlane.xlu2 %290 }
 0x12a   : > { %v317_v26 = vmul.f32 1.442695, %v302_v24  ;;  %v301_v27 = vsub.f32 %v267_v62, %v291_v25 }
 0x12b   : > { %v276_v28 = vpop.xlane.xlu0 %275 }
 0x12c   : > { %770 = vpow2.f32 %v317_v26  ;;  %v296_v29 = vsub.f32 %v257_v3, %v276_v28  ;;  %v315_v31 = vmul.f32 1.442695, %v301_v27 }
 0x12e   : > { %v305_v32 = vmul.f32 1.442695, %v296_v29 }
 0x12f   : > { %v282_v33 = vpop.xlane.xlu1 %281 }
 0x130   : > { %772 = vpow2.f32 %v305_v32  ;;  %v298_v34 = vsub.f32 %v261_v9, %v282_v33 }
 0x131   : > { %v279_v35 = vpop.xlane.xlu2 %278  ;;  %774 = vpow2.f32 %v315_v31 }
 0x132   : > { %v1074_v36 = vpop.eup %770  ;;  %v309_v37 = vmul.f32 1.442695, %v298_v34  ;;  %v297_v38 = vsub.f32 %v259_v11, %v279_v35 }
 0x133   : > { %v340_v39 = vsel %vm270_vm1, %v1074_v36, 0.0  ;;  %v288_v42 = vpop.xlane.xlu0 %287 }
 0x134   : > { %776 = vpow2.f32 %v309_v37  ;;  %341 = vadd.xlane.f32.xlu0 %v340_v39  ;;  %v307_v41 = vmul.f32 1.442695, %v297_v38  ;;  %v300_v49 = vsub.f32 %v265_v14, %v288_v42 }
 0x136   : > { %v1078_v40 = vpop.eup %772  ;;  %778 = vpow2.f32 %v307_v41  ;;  %v313_v55 = vmul.f32 1.442695, %v300_v49 }
 0x137   : > { %v273_v43 = vpop.xlane.xlu1 %272  ;;  %v322_v44 = vsel %vm270_vm1, %v1078_v40, 0.0  ;;  %v1082_v45 = vpop.eup %774 }
 0x138   : > { %v295_v46 = vsub.f32 %v255_v19, %v273_v43  ;;  %323 = vadd.xlane.f32.xlu1 %v322_v44  ;;  %v337_v52 = vsel %vm270_vm1, %v1082_v45, 0.0 }
 0x139   : > { %v285_v47 = vpop.xlane.xlu2 %284 }
 0x13a   : > { %v1084_v48 = vpop.eup %776  ;;  %v303_v50 = vmul.f32 1.442695, %v295_v46  ;;  %v299_v51 = vsub.f32 %v263_v20, %v285_v47 }
 0x13b   : > { %v328_v53 = vsel %vm270_vm1, %v1084_v48, 0.0 }
 0x13c   : > { %780 = vpow2.f32 %v303_v50  ;;  %v311_v54 = vmul.f32 1.442695, %v299_v51  ;;  %338 = vadd.xlane.f32.xlu0 %v337_v52  ;;  %329 = vadd.xlane.f32.xlu2 %v328_v53  ;;  %v1090_v56 = vpop.eup %778 }
 0x13d   : > { %v325_v59 = vsel %vm270_vm1, %v1090_v56, 0.0 }
 0x13e   : > { %782 = vpow2.f32 %v311_v54 }
 0x13f   : > { %784 = vpow2.f32 %v313_v55 }
 0x142   : > { %v1092_v57 = vpop.eup %780 }
 0x143   : > { %v319_v58 = vsel %vm270_vm1, %v1092_v57, 0.0 }
 0x144   : > { %v1098_v60 = vpop.eup %782  ;;  %320 = vadd.xlane.f32.xlu0 %v319_v58  ;;  %326 = vadd.xlane.f32.xlu2 %v325_v59 }
 0x145   : > { %v331_v61 = vsel %vm270_vm1, %v1098_v60, 0.0  ;;  %v1102_v62 = vpop.eup %784 }
 0x146   : > { %332 = vadd.xlane.f32.xlu1 %v331_v61  ;;  %v334_v63 = vsel %vm270_vm1, %v1102_v62, 0.0 }
 0x14c   : > { %335 = vadd.xlane.f32.xlu2 %v334_v63 }
 0x1a7   : > { %v342_v0 = vpop.xlane.xlu0 %341 }
 0x1a8   : > { %786 = vrcp.f32 %v342_v0  ;;  %v457_v9 = vand.u32 2147483647, %v342_v0  ;;  %v459_v11 = vand.u32 2147483648, %v342_v0  ;;  %vm453_vm2 = vweird.f32 %v342_v0 }
 0x1aa   : > { %vm1114_vm3 = vcmp.eq.f32.partialorder %v457_v9, 8.507059e+37  ;;  %v460_v22 = vor.u32 1.1754944e-38, %v459_v11 }
 0x1ab   : > { %v324_v1 = vpop.xlane.xlu1 %323 }
 0x1ac   : > { %788 = vrcp.f32 %v324_v1  ;;  %v367_v15 = vand.u32 2147483647, %v324_v1  ;;  %vm363_vm4 = vweird.f32 %v324_v1  ;;  %v369_v25 = vand.u32 2147483648, %v324_v1 }
 0x1ae   : > { %v787_v2 = vpop.eup %786  ;;  %vm1126_vm6 = vcmp.eq.f32.partialorder %v367_v15, 8.507059e+37  ;;  %v370_v42 = vor.u32 1.1754944e-38, %v369_v25 }
 0x1af   : > { %v449_v3 = vmul.f32 %v787_v2, %v342_v0  ;;  %v1106_v4 = vpop.xlane.xlu0 %338  ;;  %v330_v5 = vpop.xlane.xlu2 %329  ;;  %vm454_vm5 = vweird.f32 %v787_v2 }
 0x1b0   : > { %790 = vrcp.f32 %v1106_v4  ;;  %v442_v28 = vand.u32 2147483647, %v1106_v4  ;;  %v399_v33 = vand.u32 2147483648, %v330_v5  ;;  %vm1138_vm8 = vmor %vm453_vm2, %vm454_vm5  ;;  %v444_v37 = vand.u32 2147483648, %v1106_v4 }
 0x1b1   : > { %v450_v6 = vsub.f32 1.0, %v449_v3  ;;  %792 = vrcp.f32 %v330_v5  ;;  %v397_v39 = vand.u32 2147483647, %v330_v5  ;;  %vm438_vm10 = vweird.f32 %v1106_v4 }
 0x1b2   : > { %v1109_v8 = vpop.eup %788  ;;  %vm393_vm11 = vweird.f32 %v330_v5  ;;  %vm1157_vm14 = vcmp.eq.f32.partialorder %v442_v28, 8.507059e+37  ;;  %v400_v51 = vor.u32 1.1754944e-38, %v399_v33  ;;  %v445_v55 = vor.u32 1.1754944e-38, %v444_v37 }
 0x1b3   : > { %v359_v10 = vmul.f32 %v1109_v8, %v324_v1  ;;  %v451_v12 = vmul.f32 %v787_v2, %v450_v6  ;;  %vm364_vm7 = vweird.f32 %v1109_v8  ;;  %vm398_vm2 = vcmp.eq.f32.partialorder %v397_v39, 8.507059e+37 }
 0x1b4   : > { %vm1147_vm12 = vmor %vm363_vm4, %vm364_vm7 }
 0x1b5   : > { %v360_v13 = vsub.f32 1.0, %v359_v10  ;;  %v452_v24 = vadd.f32 %v787_v2, %v451_v12 }
 0x1b6   : > { %v1112_v14 = vpop.eup %790 }
 0x1b7   : > { %v793_v16 = vpop.eup %792  ;;  %v361_v18 = vmul.f32 %v1109_v8, %v360_v13  ;;  %v434_v19 = vmul.f32 %v1112_v14, %v1106_v4  ;;  %v1121_v20 = vpop.xlane.xlu0 %320  ;;  %v456_v41 = vsel %vm1138_vm8, %v787_v2, %v452_v24  ;;  %vm439_vm13 = vweird.f32 %v1112_v14 }
 0x1b8   : > { %v1123_v21 = vpop.xlane.xlu2 %326  ;;  %v389_v23 = vmul.f32 %v793_v16, %v330_v5  ;;  %794 = vrcp.f32 %v1121_v20  ;;  %vm394_vm9 = vweird.f32 %v793_v16  ;;  %v1164_v54 = vsel %vm1114_vm3, %v460_v22, %v456_v41  ;;  %vm1170_vm4 = vmor %vm438_vm10, %vm439_vm13 }
 0x1b9   : > { %v435_v26 = vsub.f32 1.0, %v434_v19  ;;  %796 = vrcp.f32 %v1123_v21  ;;  %v362_v31 = vadd.f32 %v1109_v8, %v361_v18  ;;  %v1135_v34 = vpop.xlane.xlu1 %332  ;;  %vm395_vm15 = vmor %vm393_vm11, %vm394_vm9  ;;  %v352_v1 = vand.u32 2147483647, %v1121_v20 }
 0x1ba   : > { %v390_v29 = vsub.f32 1.0, %v389_v23  ;;  %798 = vrcp.f32 %v1135_v34  ;;  %v354_v4 = vand.u32 2147483648, %v1121_v20  ;;  %vm348_vm5 = vweird.f32 %v1121_v20 }
 0x1bb   : > { %v436_v32 = vmul.f32 %v1112_v14, %v435_v26  ;;  %v366_v49 = vsel %vm1147_vm12, %v1109_v8, %v362_v31  ;;  %vm378_vm7 = vweird.f32 %v1123_v21  ;;  %v382_v11 = vand.u32 2147483647, %v1123_v21 }
 0x1bc   : > { %v391_v38 = vmul.f32 %v793_v16, %v390_v29  ;;  %v371_v3 = vsel %vm1126_vm6, %v370_v42, %v366_v49  ;;  %v384_v12 = vand.u32 2147483648, %v1123_v21  ;;  %vm353_vm9 = vcmp.eq.f32.partialorder %v352_v1, 8.507059e+37 }
 0x1bd   : > { %v437_v46 = vadd.f32 %v1112_v14, %v436_v32  ;;  %v355_v17 = vor.u32 1.1754944e-38, %v354_v4  ;;  %v412_v25 = vand.u32 2147483647, %v1135_v34  ;;  %vm383_vm11 = vcmp.eq.f32.partialorder %v382_v11, 8.507059e+37 }
 0x1be   : > { %v795_v43 = vpop.eup %794  ;;  %v392_v47 = vadd.f32 %v793_v16, %v391_v38  ;;  %v385_v24 = vor.u32 1.1754944e-38, %v384_v12  ;;  %vm408_vm13 = vweird.f32 %v1135_v34 }
 0x1bf   : > { %v344_v52 = vmul.f32 %v795_v43, %v1121_v20  ;;  %v797_v53 = vpop.eup %796  ;;  %v441_v5 = vsel %vm1170_vm4, %v1112_v14, %v437_v46  ;;  %vm349_vm3 = vweird.f32 %v795_v43 }
 0x1c0   : > { %v396_v58 = vsel %vm395_vm15, %v793_v16, %v392_v47  ;;  %v1166_v59 = vpop.xlane.xlu2 %335  ;;  %v374_v2 = vmul.f32 %v797_v53, %v1123_v21  ;;  %v799_v10 = vpop.eup %798  ;;  %vm379_vm6 = vweird.f32 %v797_v53  ;;  %v446_v16 = vsel %vm1157_vm14, %v445_v55, %v441_v5  ;;  %vm350_vm8 = vmor %vm348_vm5, %vm349_vm3 }
 0x1c1   : > { %v401_v63 = vsel %vm398_vm2, %v400_v51, %v396_v58  ;;  %v345_v0 = vsub.f32 1.0, %v344_v52  ;;  %800 = vrcp.f32 %v1166_v59  ;;  %v404_v15 = vmul.f32 %v799_v10, %v1135_v34  ;;  %vm380_vm10 = vmor %vm378_vm7, %vm379_vm6 }
 0x1c2   : > { %v1183_v6 = vmul.f32 %v1084_v48, %v401_v63  ;;  %v375_v9 = vsub.f32 1.0, %v374_v2  ;;  %v372_v48 = vmul.f32 %v1078_v40, %v371_v3  ;;  %v414_v40 = vand.u32 2147483648, %v1135_v34 }
 0x1c3   : > { %v346_v8 = vmul.f32 %v795_v43, %v345_v0  ;;  %v405_v22 = vsub.f32 1.0, %v404_v15  ;;  %vm409_vm12 = vweird.f32 %v799_v10  ;;  %v447_v29 = vmul.f32 %v1082_v45, %v446_v16 }
 0x1c4   : > { %v376_v14 = vmul.f32 %v797_v53, %v375_v9  ;;  %v475_v18 = vrot.slane %v1183_v6, 4  ;;  %v477_v38 = vrot.slane %v372_v48, 4  ;;  %vm410_vm14 = vmor %vm408_vm13, %vm409_vm12  ;;  %vm413_vm15 = vcmp.eq.f32.partialorder %v412_v25, 8.507059e+37 }
 0x1c5   : > { %v347_v13 = vadd.f32 %v795_v43, %v346_v8  ;;  %v406_v28 = vmul.f32 %v799_v10, %v405_v22  ;;  %v415_v39 = vor.u32 1.1754944e-38, %v414_v40  ;;  %v427_v45 = vand.u32 2147483647, %v1166_v59 }
 0x1c6   : > { %v377_v20 = vadd.f32 %v797_v53, %v376_v14  ;;  %v476_v37 = vsel %vm158_vm0, %v475_v18, %v372_v48  ;;  %v429_v34 = vand.u32 2147483648, %v1166_v59  ;;  %v462_v51 = vmul.f32 %v1074_v36, %v1164_v54 }
 0x1c7   : > { %v351_v19 = vsel %vm350_vm8, %v795_v43, %v347_v13  ;;  %v801_v26 = vpop.eup %800  ;;  %v407_v35 = vadd.f32 %v799_v10, %v406_v28  ;;  %vm423_vm4 = vweird.f32 %v1166_v59  ;;  %v478_v63 = vsel %vm158_vm0, %v1183_v6, %v477_v38 }
 0x1c8   : > { %v356_v23 = vsel %vm353_vm9, %v355_v17, %v351_v19  ;;  %v381_v27 = vsel %vm380_vm10, %v797_v53, %v377_v20  ;;  %v419_v32 = vmul.f32 %v801_v26, %v1166_v59  ;;  %vm424_vm2 = vweird.f32 %v801_v26 }
 0x1c9   : > { %v386_v31 = vsel %vm383_vm11, %v385_v24, %v381_v27  ;;  %v357_v21 = vmul.f32 %v1092_v57, %v356_v23  ;;  %v411_v43 = vsel %vm410_vm14, %v799_v10, %v407_v35  ;;  %v482_v57 = vperm.slane %v476_v37, %v1022_v7  ;;  %vm425_vm3 = vmor %vm423_vm4, %vm424_vm2 }
 0x1ca   : > { %v387_v33 = vmul.f32 %v1090_v56, %v386_v31  ;;  %v420_v41 = vsub.f32 1.0, %v419_v32  ;;  %v416_v44 = vsel %vm413_vm15, %v415_v39, %v411_v43  ;;  %v487_v56 = vrot.slane %v447_v29, 4 }
 0x1cb   : > { %v465_v47 = vrot.slane %v357_v21, 4  ;;  %v417_v49 = vmul.f32 %v1098_v60, %v416_v44  ;;  %v430_v58 = vor.u32 1.1754944e-38, %v429_v34  ;;  %vm428_vm5 = vcmp.eq.f32.partialorder %v427_v45, 8.507059e+37 }
 0x1cc   : > { %v463_v42 = vrot.slane %v387_v33, 4  ;;  %v421_v46 = vmul.f32 %v801_v26, %v420_v41  ;;  %v511_v1 = vrot.slane %v482_v57, 4  ;;  %v499_v3 = vrot.slane %v462_v51, 4 }
 0x1cd   : > { %v489_v55 = vrot.slane %v417_v49, 4  ;;  %v488_v61 = vsel %vm158_vm0, %v487_v56, %v417_v49  ;;  %v466_v54 = vsel %vm158_vm0, %v387_v33, %v465_v47  ;;  %v486_v8 = vperm.slane %v478_v63, %v1022_v7 }
 0x1ce   : > { %v464_v50 = vsel %vm158_vm0, %v463_v42, %v357_v21  ;;  %v422_v52 = vadd.f32 %v801_v26, %v421_v46  ;;  %v494_v36 = vperm.slane %v488_v61, %v1022_v7  ;;  %v474_v13 = vperm.slane %v466_v54, %v1022_v7 }
 0x1cf   : > { %v470_v53 = vperm.slane %v464_v50, %v1022_v7  ;;  %v490_v59 = vsel %vm158_vm0, %v447_v29, %v489_v55  ;;  %v523_v16 = vrot.slane %v486_v8, 4  ;;  %vm604_vm7 = vcmask 261120  }
 0x1d0   : > { %v426_v0 = vsel %vm425_vm3, %v801_v26, %v422_v52  ;;  %v498_v9 = vperm.slane %v490_v59, %v1022_v7  ;;  %v537_v15 = vrot.slane %v494_v36, 4  ;;  %v525_v21 = vrot.slane %v474_v13, 4 }
 0x1d1   : > { %v513_v60 = vrot.slane %v470_v53, 4  ;;  %v431_v2 = vsel %vm428_vm5, %v430_v58, %v426_v0  ;;  %v512_v6 = vsel %vm158_vm0, %v511_v1, %v470_v53  ;;  %v524_v24 = vsel %vm158_vm0, %v523_v16, %v474_v13 }
 0x1d2   : > { %v432_v5 = vmul.f32 %v1102_v62, %v431_v2  ;;  %v518_v62 = vperm.slane %v512_v6, %v1034_v30  ;;  %v549_v20 = vrot.slane %v498_v9, 4  ;;  %v526_v42 = vsel %vm158_vm0, %v486_v8, %v525_v21 }
 0x1d3   : > { %v514_v4 = vsel %vm158_vm0, %v482_v57, %v513_v60  ;;  %v534_v46 = vperm.slane %v526_v42, %v1034_v30  ;;  %vm606_vm6 = vcmask 392192   ;;  %vm608_vm8 = vcmask 523264  }
 0x1d4   : > { %v501_v10 = vrot.slane %v432_v5, 4  ;;  %v500_v11 = vsel %vm158_vm0, %v499_v3, %v432_v5  ;;  %v522_v12 = vperm.slane %v514_v4, %v1034_v30  ;;  %v561_v31 = vrot.slane %v518_v62, 4 }
 0x1d5   : > { %v506_v14 = vperm.slane %v500_v11, %v1022_v7  ;;  %v573_v47 = vrot.slane %v534_v46, 4  ;;  %vm610_vm9 = vcmask 654336  }
 0x1d6   : > { %v502_v48 = vsel %vm158_vm0, %v462_v51, %v501_v10  ;;  %v565_v23 = vrot.slane %v522_v12, 4 }
 0x1d7   : > { %v538_v17 = vsel %vm158_vm0, %v506_v14, %v537_v15  ;;  %v535_v18 = vrot.slane %v506_v14, 4  ;;  %v510_v19 = vperm.slane %v502_v48, %v1022_v7  ;;  %v530_v7 = vperm.slane %v524_v24, %v1034_v30 }
 0x1d8   : > { %v546_v22 = vperm.slane %v538_v17, %v1034_v30 }
 0x1d9   : > { %v536_v25 = vsel %vm158_vm0, %v535_v18, %v494_v36  ;;  %v547_v40 = vrot.slane %v510_v19, 4  ;;  %v550_v26 = vsel %vm158_vm0, %v510_v19, %v549_v20  ;;  %v569_v43 = vrot.slane %v530_v7, 4 }
 0x1da   : > { %v566_v27 = vsel %vm158_vm0, %v546_v22, %v565_v23  ;;  %v563_v28 = vrot.slane %v546_v22, 4  ;;  %v542_v29 = vperm.slane %v536_v25, %v1034_v30  ;;  %v558_v33 = vperm.slane %v550_v26, %v1034_v30 }
 0x1db   : > { %584 = vrot.lane.b32.xlu0 %v566_v27, %s905_s28  ;;  %v548_v32 = vsel %vm158_vm0, %v547_v40, %v498_v9 }
 0x1dc   : > { %v564_v35 = vsel %vm158_vm0, %v563_v28, %v522_v12  ;;  %v562_v37 = vsel %vm158_vm0, %v542_v29, %v561_v31  ;;  %v559_v38 = vrot.slane %v542_v29, 4  ;;  %v554_v39 = vperm.slane %v548_v32, %v1034_v30 }
 0x1dd   : > { %580 = vrot.lane.b32.xlu2 %v564_v35, %s903_s26  ;;  %576 = vrot.lane.b32.xlu1 %v562_v37, %s906_s17  ;;  %v571_v45 = vrot.slane %v558_v33, 4  ;;  %v574_v49 = vsel %vm158_vm0, %v558_v33, %v573_v47 }
 0x1de   : > { %v560_v41 = vsel %vm158_vm0, %v559_v38, %v518_v62  ;;  %v567_v34 = vrot.slane %v554_v39, 4  ;;  %v570_v44 = vsel %vm158_vm0, %v554_v39, %v569_v43 }
 0x1df   : > { %v572_v57 = vsel %vm158_vm0, %v571_v45, %v534_v46 }
 0x1e0   : > { %v568_v56 = vsel %vm158_vm0, %v567_v34, %v530_v7  ;;  %vm612_vm0 = vcmask 785408  }
 0x1e3   : > { %592 = vrot.lane.b32.xlu0 %v570_v44, %s900_s23 }
 0x1e5   : > { %596 = vrot.lane.b32.xlu2 %v572_v57, %s901_s24  ;;  %588 = vrot.lane.b32.xlu1 %v568_v56, %s904_s27 }
 0x1ed   : > { %600 = vrot.lane.b32.xlu1 %v574_v49, %s902_s25 }
 0x237   : > { %v581_v52 = vpop.permute.xlu2 %580 }
 0x23f   : > { %v597_v60 = vpop.permute.xlu2 %596 }
 0x24d   : > { %v585_v51 = vpop.permute.xlu0 %584 }
 0x24f   : > { %v577_v50 = vpop.permute.xlu1 %576 }
 0x250   : > { %v603_v30 = vsel %vm270_vm1, %v560_v41, %v577_v50  ;;  %vm614_vm1 = vcmask 916480  }
 0x251   : > { %v605_v53 = vsel %vm604_vm7, %v603_v30, %v581_v52 }
 0x252   : > { %v607_v58 = vsel %vm606_vm6, %v605_v53, %v585_v51 }
 0x255   : > { %v593_v63 = vpop.permute.xlu0 %592 }
 0x257   : > { %v589_v55 = vpop.permute.xlu1 %588 }
 0x258   : > { %v609_v61 = vsel %vm608_vm8, %v607_v58, %v589_v55 }
 0x259   : > { %v611_v0 = vsel %vm610_vm9, %v609_v61, %v593_v63 }
 0x25a   : > { %v613_v2 = vsel %vm612_vm0, %v611_v0, %v597_v60 }
 0x25f   : > { %v601_v1 = vpop.permute.xlu1 %600 }
 0x260   : > { %v615_v36 = vsel %vm614_vm1, %v613_v2, %v601_v1 }
 0x261   : > { %616 = vst [vmem:[%s133_s4] sm:$0xff] %v615_v36 }
 0x262   : > { %859 = shalt.err (!%p856_p4)
}
 0x263   : > { %717 = dma.vmem_to_hbm [thread:$0]  (%p969_p11), %s631_s5, 128, %s633_s11, %s618_s10  }
 0x264 PF: > { %s644_s16 = sand.u32 1, %s886_s6   ;;  %p1315_p7 = scmp.ge.s32.totalorder %s898_s9, 2 }
 0x265   : > { %s645_s25 = scalar_lea.sflag [#allocation4], %s644_s16 }
 0x266   : > { %p724_p5 = pnand %p1315_p7, %p973_p12 }
 0x268   : > { %p725_p8 = pneg %p724_p5 }
 0x26a   : > { %881 = dma.done.wait (%p725_p8), %s645_s25, 128  }
 0x26b   : > { %883 = vsyncadd (%p725_p8), %s645_s25, 4294967168  ;;  %p14_p10 = scmp.ge.s32.totalorder %s944_s12, 4   ;;  %s1316_s6 = smov %s890_s7 }
 0x26c   : > { %s1317_s7 = smov %s894_s8  ;;  %s1318_s8 = smov %s956_s15 }
 0x26d   : > { %s1319_s9 = smov %s944_s12  ;;  %16 = sbr.rel (!%p14_p10) target bundleno = 5 (0x5), region = 69 }
 0x272   :  { %651 = vsyncpa [#allocation3], 1 }
 0x273   :  { %653 = vsyncpa [#allocation3 + $0x1], 1 }
 0x274   :  { %654 = vsyncpa [#allocation4], 1 }
 0x275   :  { %656 = vsyncpa [#allocation4 + $0x1], 1 }

// kernel: tpu_custom_call.1
= control target key start
LH: loop header
LB: loop body
LE: loop exit
PB: predicated region body
PF: predicated region fallthrough
CT: control target
= control target key end

     0   :  { %s454_s6 = smov 0   ;;  %s593_s0 = inlined_call_operand.vmem [shape: f32[128,16], index: 0, kind: input, shape index: {}]   ;;  %s594_s1 = inlined_call_operand.vmem [shape: f32[128,16], index: 1, kind: output, shape index: {}]  }
   0x1 LB: > { %s385_s7 = sadd.s32 4294967295, %s442_s6   ;;  %p389_p0 = scmp.ge.s32.totalorder %s442_s6, 1  ;;  %s442_s6 = sphi %s454_s6, %s11_s6  }
   0x2   : > { %p88_p1 = scmp.lt.s32.totalorder %s442_s6, 3 }
   0x4   : > { %p89_p2 = pnand %p389_p0, %p88_p1 }
   0x5   : > { %s390_s8 = sshll.u32 (!%p89_p2), %s385_s7, 3 }
   0x6   : > { %92 = sbr.rel (%p89_p2) target bundleno = 306 (0x132), region = 24  ;;  %p109_p3 = scmp.lt.s32.totalorder (!%p89_p2), %s390_s8, 15 }
   0xb   : > { %s602_s8 = smov (!%p109_p3, %s390_s8), 15  ;;  %vm128_vm0 = vcmask 130048  }
   0xc   : > { %s391_s9 = sshll.u32 %s602_s8, 3 }
   0xd   : > { %s112_s12 = scalar_lea.vmem %s593_s0, %s391_s9  ;;  %s529_s15 = scalar_lea.vmem %s594_s1, %s391_s9 }
   0xe   : > { %v124_v0 = vld [vmem:[%s112_s12 + $0x20] sm:$0xff]  ;;  %v122_v1 = vld [vmem:[%s112_s12 + $0x10] sm:$0xff]  ;;  %v125_v6 = vld [vmem:[%s112_s12 + $0x28] sm:$0xff] }
   0xf   : > { %v120_v2 = vld [vmem:[%s112_s12] sm:$0xff]  ;;  %v141_v3 = vsel %vm128_vm0, %v124_v0, -inf  ;;  %v135_v4 = vsel %vm128_vm0, %v122_v1, -inf  ;;  %v123_v7 = vld [vmem:[%s112_s12 + $0x18] sm:$0xff]  ;;  %v121_v8 = vld [vmem:[%s112_s12 + $0x8] sm:$0xff]  ;;  %v144_v9 = vsel %vm128_vm0, %v125_v6, -inf }
  0x10   : > { %v129_v5 = vsel %vm128_vm0, %v120_v2, -inf  ;;  %142 = vmax.xlane.f32.xlu2 %v141_v3  ;;  %136 = vmax.xlane.f32.xlu1 %v135_v4  ;;  %v138_v10 = vsel %vm128_vm0, %v123_v7, -inf  ;;  %v132_v11 = vsel %vm128_vm0, %v121_v8, -inf  ;;  %v127_v12 = vld [vmem:[%s112_s12 + $0x38] sm:$0xff]  ;;  %v126_v13 = vld [vmem:[%s112_s12 + $0x30] sm:$0xff] }
  0x11   : > { %130 = vmax.xlane.f32.xlu0 %v129_v5  ;;  %v150_v14 = vsel %vm128_vm0, %v127_v12, -inf  ;;  %v147_v15 = vsel %vm128_vm0, %v126_v13, -inf }
  0x18   : > { %145 = vmax.xlane.f32.xlu2 %v144_v9  ;;  %139 = vmax.xlane.f32.xlu1 %v138_v10 }
  0x19   : > { %133 = vmax.xlane.f32.xlu0 %v132_v11 }
  0x20   : > { %151 = vmax.xlane.f32.xlu1 %v150_v14 }
  0x21   : > { %148 = vmax.xlane.f32.xlu0 %v147_v15 }
  0x83   : > { %v143_v16 = vpop.xlane.xlu2 %142  ;;  %v137_v17 = vpop.xlane.xlu1 %136 }
  0x84   : > { %v155_v18 = vsub.f32 %v122_v1, %v137_v17  ;;  %v131_v19 = vpop.xlane.xlu0 %130  ;;  %v157_v29 = vsub.f32 %v124_v0, %v143_v16 }
  0x85   : > { %v153_v20 = vsub.f32 %v120_v2, %v131_v19 }
  0x86   : > { %v165_v21 = vmul.f32 1.442695, %v155_v18  ;;  %v169_v37 = vmul.f32 1.442695, %v157_v29 }
  0x87   : > { %v161_v22 = vmul.f32 1.442695, %v153_v20 }
  0x88   : > { %404 = vpow2.f32 %v165_v21 }
  0x89   : > { %406 = vpow2.f32 %v161_v22 }
  0x8b   : > { %v146_v23 = vpop.xlane.xlu2 %145  ;;  %v140_v24 = vpop.xlane.xlu1 %139 }
  0x8c   : > { %v158_v25 = vsub.f32 %v125_v6, %v146_v23  ;;  %v156_v26 = vsub.f32 %v123_v7, %v140_v24  ;;  %v134_v27 = vpop.xlane.xlu0 %133 }
  0x8d   : > { %v154_v28 = vsub.f32 %v121_v8, %v134_v27 }
  0x8e   : > { %v171_v30 = vmul.f32 1.442695, %v158_v25  ;;  %v167_v31 = vmul.f32 1.442695, %v156_v26  ;;  %v478_v32 = vpop.eup %404 }
  0x8f   : > { %v163_v33 = vmul.f32 1.442695, %v154_v28  ;;  %v480_v34 = vpop.eup %406  ;;  %v183_v35 = vsel %vm128_vm0, %v478_v32, 0.0 }
  0x90   : > { %408 = vpow2.f32 %v171_v30  ;;  %184 = vadd.xlane.f32.xlu1 %v183_v35  ;;  %v177_v36 = vsel %vm128_vm0, %v480_v34, 0.0 }
  0x91   : > { %410 = vpow2.f32 %v167_v31  ;;  %178 = vadd.xlane.f32.xlu2 %v177_v36 }
  0x92   : > { %412 = vpow2.f32 %v163_v33 }
  0x93   : > { %v152_v38 = vpop.xlane.xlu1 %151  ;;  %414 = vpow2.f32 %v169_v37 }
  0x94   : > { %v149_v39 = vpop.xlane.xlu0 %148  ;;  %v160_v42 = vsub.f32 %v127_v12, %v152_v38 }
  0x95   : > { %v159_v40 = vsub.f32 %v126_v13, %v149_v39 }
  0x96   : > { %v486_v41 = vpop.eup %408  ;;  %v175_v49 = vmul.f32 1.442695, %v160_v42 }
  0x97   : > { %v488_v43 = vpop.eup %410  ;;  %v173_v44 = vmul.f32 1.442695, %v159_v40  ;;  %v192_v45 = vsel %vm128_vm0, %v486_v41, 0.0 }
  0x98   : > { %v492_v46 = vpop.eup %412  ;;  %v186_v47 = vsel %vm128_vm0, %v488_v43, 0.0  ;;  %193 = vadd.xlane.f32.xlu1 %v192_v45 }
  0x99   : > { %416 = vpow2.f32 %v173_v44  ;;  %v180_v48 = vsel %vm128_vm0, %v492_v46, 0.0  ;;  %187 = vadd.xlane.f32.xlu2 %v186_v47  ;;  %v498_v50 = vpop.eup %414 }
  0x9a   : > { %181 = vadd.xlane.f32.xlu0 %v180_v48  ;;  %418 = vpow2.f32 %v175_v49  ;;  %v189_v52 = vsel %vm128_vm0, %v498_v50, 0.0 }
  0x9f   : > { %v500_v51 = vpop.eup %416 }
  0xa0   : > { %v195_v53 = vsel %vm128_vm0, %v500_v51, 0.0  ;;  %v506_v54 = vpop.eup %418 }
  0xa1   : > { %196 = vadd.xlane.f32.xlu2 %v195_v53  ;;  %v198_v55 = vsel %vm128_vm0, %v506_v54, 0.0 }
  0xa2   : > { %190 = vadd.xlane.f32.xlu0 %v189_v52 }
  0xaa   : > { %199 = vadd.xlane.f32.xlu0 %v198_v55 }
 0x103   : > { %v185_v56 = vpop.xlane.xlu1 %184 }
 0x104   : > { %420 = vrcp.f32 %v185_v56  ;;  %v179_v57 = vpop.xlane.xlu2 %178  ;;  %v240_v2 = vand.u32 2147483647, %v185_v56  ;;  %v242_v3 = vand.u32 2147483648, %v185_v56  ;;  %vm236_vm1 = vweird.f32 %v185_v56 }
 0x105   : > { %422 = vrcp.f32 %v179_v57  ;;  %v210_v5 = vand.u32 2147483647, %v179_v57  ;;  %v212_v6 = vand.u32 2147483648, %v179_v57  ;;  %vm206_vm5 = vweird.f32 %v179_v57 }
 0x106   : > { %vm516_vm4 = vcmp.eq.f32.partialorder %v240_v2, 8.507059e+37  ;;  %v243_v11 = vor.u32 1.1754944e-38, %v242_v3 }
 0x107   : > { %vm520_vm7 = vcmp.eq.f32.partialorder %v210_v5, 8.507059e+37  ;;  %v213_v15 = vor.u32 1.1754944e-38, %v212_v6 }
 0x10a   : > { %v421_v58 = vpop.eup %420 }
 0x10b   : > { %v423_v59 = vpop.eup %422  ;;  %v232_v60 = vmul.f32 %v421_v58, %v185_v56  ;;  %v194_v61 = vpop.xlane.xlu1 %193  ;;  %vm237_vm2 = vweird.f32 %v421_v58 }
 0x10c   : > { %v202_v62 = vmul.f32 %v423_v59, %v179_v57  ;;  %424 = vrcp.f32 %v194_v61  ;;  %v510_v63 = vpop.xlane.xlu2 %187  ;;  %vm207_vm3 = vweird.f32 %v423_v59  ;;  %vm238_vm6 = vmor %vm236_vm1, %vm237_vm2  ;;  %vm281_vm8 = vweird.f32 %v194_v61 }
 0x10d   : > { %v512_v0 = vpop.xlane.xlu0 %181  ;;  %v233_v1 = vsub.f32 1.0, %v232_v60  ;;  %426 = vrcp.f32 %v510_v63  ;;  %vm208_vm9 = vmor %vm206_vm5, %vm207_vm3  ;;  %v285_v19 = vand.u32 2147483647, %v194_v61  ;;  %v287_v20 = vand.u32 2147483648, %v194_v61 }
 0x10e   : > { %v203_v4 = vsub.f32 1.0, %v202_v62  ;;  %428 = vrcp.f32 %v512_v0  ;;  %vm251_vm10 = vweird.f32 %v510_v63  ;;  %v255_v33 = vand.u32 2147483647, %v510_v63 }
 0x10f   : > { %v234_v7 = vmul.f32 %v421_v58, %v233_v1  ;;  %v288_v37 = vor.u32 1.1754944e-38, %v287_v20  ;;  %v257_v38 = vand.u32 2147483648, %v510_v63  ;;  %vm286_vm14 = vcmp.eq.f32.partialorder %v285_v19, 8.507059e+37 }
 0x110   : > { %v204_v8 = vmul.f32 %v423_v59, %v203_v4  ;;  %v227_v42 = vand.u32 2147483648, %v512_v0  ;;  %v225_v47 = vand.u32 2147483647, %v512_v0  ;;  %vm256_vm2 = vcmp.eq.f32.partialorder %v255_v33, 8.507059e+37 }
 0x111   : > { %v235_v9 = vadd.f32 %v421_v58, %v234_v7  ;;  %v258_v49 = vor.u32 1.1754944e-38, %v257_v38  ;;  %vm221_vm3 = vweird.f32 %v512_v0 }
 0x112   : > { %v425_v12 = vpop.eup %424  ;;  %v205_v13 = vadd.f32 %v423_v59, %v204_v8  ;;  %v228_v60 = vor.u32 1.1754944e-38, %v227_v42  ;;  %vm226_vm5 = vcmp.eq.f32.partialorder %v225_v47, 8.507059e+37 }
 0x113   : > { %v427_v16 = vpop.eup %426  ;;  %v239_v17 = vsel %vm238_vm6, %v421_v58, %v235_v9  ;;  %v277_v18 = vmul.f32 %v425_v12, %v194_v61  ;;  %vm282_vm11 = vweird.f32 %v425_v12 }
 0x114   : > { %v244_v21 = vsel %vm516_vm4, %v243_v11, %v239_v17  ;;  %v209_v22 = vsel %vm208_vm9, %v423_v59, %v205_v13  ;;  %v247_v23 = vmul.f32 %v427_v16, %v510_v63  ;;  %v535_v24 = vpop.xlane.xlu2 %196  ;;  %v429_v26 = vpop.eup %428  ;;  %vm552_vm12 = vmor %vm281_vm8, %vm282_vm11  ;;  %vm252_vm13 = vweird.f32 %v427_v16 }
 0x115   : > { %v537_v25 = vpop.xlane.xlu0 %190  ;;  %v245_v27 = vmul.f32 %v478_v32, %v244_v21  ;;  %v214_v28 = vsel %vm520_vm7, %v213_v15, %v209_v22  ;;  %v278_v29 = vsub.f32 1.0, %v277_v18  ;;  %v217_v35 = vmul.f32 %v429_v26, %v512_v0  ;;  %vm253_vm1 = vmor %vm251_vm10, %vm252_vm13 }
 0x116   : > { %v215_v30 = vmul.f32 %v480_v34, %v214_v28  ;;  %v248_v31 = vsub.f32 1.0, %v247_v23  ;;  %430 = vrcp.f32 %v535_v24  ;;  %vm222_vm15 = vweird.f32 %v429_v26 }
 0x117   : > { %323 = vst.msk [vmem:[%s529_s15 + $0x10] sm:$0xff] %vm128_vm0, %v245_v27  ;;  %v279_v36 = vmul.f32 %v425_v12, %v278_v29  ;;  %v218_v39 = vsub.f32 1.0, %v217_v35  ;;  %432 = vrcp.f32 %v537_v25  ;;  %vm223_vm4 = vmor %vm221_vm3, %vm222_vm15  ;;  %vm296_vm6 = vweird.f32 %v535_v24 }
 0x118   : > { %321 = vst.msk [vmem:[%s529_s15] sm:$0xff] %vm128_vm0, %v215_v30  ;;  %v249_v34 = vmul.f32 %v427_v16, %v248_v31  ;;  %v300_v4 = vand.u32 2147483647, %v535_v24  ;;  %v270_v7 = vand.u32 2147483647, %v537_v25  ;;  %v272_v8 = vand.u32 2147483648, %v537_v25 }
 0x119   : > { %v280_v40 = vadd.f32 %v425_v12, %v279_v36  ;;  %v219_v45 = vmul.f32 %v429_v26, %v218_v39  ;;  %vm266_vm11 = vweird.f32 %v537_v25 }
 0x11a   : > { %v250_v44 = vadd.f32 %v427_v16, %v249_v34  ;;  %vm301_vm10 = vcmp.eq.f32.partialorder %v300_v4, 8.507059e+37  ;;  %vm271_vm13 = vcmp.eq.f32.partialorder %v270_v7, 8.507059e+37  ;;  %v273_v15 = vor.u32 1.1754944e-38, %v272_v8 }
 0x11b   : > { %v284_v48 = vsel %vm552_vm12, %v425_v12, %v280_v40  ;;  %v220_v55 = vadd.f32 %v429_v26, %v219_v45 }
 0x11c   : > { %v289_v52 = vsel %vm286_vm14, %v288_v37, %v284_v48  ;;  %v254_v53 = vsel %vm253_vm1, %v427_v16, %v250_v44  ;;  %v431_v57 = vpop.eup %430 }
 0x11d   : > { %v200_v56 = vpop.xlane.xlu0 %199  ;;  %v290_v58 = vmul.f32 %v486_v41, %v289_v52  ;;  %v259_v59 = vsel %vm256_vm2, %v258_v49, %v254_v53  ;;  %v433_v61 = vpop.eup %432  ;;  %v224_v63 = vsel %vm223_vm4, %v429_v26, %v220_v55  ;;  %v292_v1 = vmul.f32 %v431_v57, %v535_v24 }
 0x11e   : > { %434 = vrcp.f32 %v200_v56  ;;  %v260_v62 = vmul.f32 %v488_v43, %v259_v59  ;;  %v229_v0 = vsel %vm226_vm5, %v228_v60, %v224_v63  ;;  %v262_v2 = vmul.f32 %v433_v61, %v537_v25 }
 0x11f   : > { %326 = vst.msk [vmem:[%s529_s15 + $0x28] sm:$0xff] %vm128_vm0, %v290_v58  ;;  %v230_v41 = vmul.f32 %v492_v46, %v229_v0  ;;  %v293_v3 = vsub.f32 1.0, %v292_v1  ;;  %v302_v43 = vand.u32 2147483648, %v535_v24  ;;  %vm297_vm7 = vweird.f32 %v431_v57 }
 0x120   : > { %324 = vst.msk [vmem:[%s529_s15 + $0x18] sm:$0xff] %vm128_vm0, %v260_v62  ;;  %v263_v5 = vsub.f32 1.0, %v262_v2  ;;  %vm267_vm8 = vweird.f32 %v433_v61  ;;  %vm298_vm9 = vmor %vm296_vm6, %vm297_vm7  ;;  %v315_v19 = vand.u32 2147483647, %v200_v56  ;;  %v317_v20 = vand.u32 2147483648, %v200_v56 }
 0x121   : > { %322 = vst.msk [vmem:[%s529_s15 + $0x8] sm:$0xff] %vm128_vm0, %v230_v41  ;;  %v294_v6 = vmul.f32 %v431_v57, %v293_v3  ;;  %v303_v12 = vor.u32 1.1754944e-38, %v302_v43  ;;  %vm268_vm12 = vmor %vm266_vm11, %vm267_vm8  ;;  %vm311_vm15 = vweird.f32 %v200_v56 }
 0x122   : > { %v264_v10 = vmul.f32 %v433_v61, %v263_v5  ;;  %v318_v26 = vor.u32 1.1754944e-38, %v317_v20  ;;  %vm316_vm2 = vcmp.eq.f32.partialorder %v315_v19, 8.507059e+37 }
 0x123   : > { %v295_v46 = vadd.f32 %v431_v57, %v294_v6 }
 0x124   : > { %v435_v9 = vpop.eup %434  ;;  %v265_v13 = vadd.f32 %v433_v61, %v264_v10 }
 0x125   : > { %v307_v11 = vmul.f32 %v435_v9, %v200_v56  ;;  %v299_v14 = vsel %vm298_vm9, %v431_v57, %v295_v46  ;;  %vm312_vm14 = vweird.f32 %v435_v9 }
 0x126   : > { %v304_v17 = vsel %vm301_vm10, %v303_v12, %v299_v14  ;;  %v269_v18 = vsel %vm268_vm12, %v433_v61, %v265_v13  ;;  %vm313_vm1 = vmor %vm311_vm15, %vm312_vm14 }
 0x127   : > { %v308_v16 = vsub.f32 1.0, %v307_v11  ;;  %v305_v21 = vmul.f32 %v500_v51, %v304_v17  ;;  %v274_v22 = vsel %vm271_vm13, %v273_v15, %v269_v18 }
 0x128   : > { %v275_v24 = vmul.f32 %v498_v50, %v274_v22 }
 0x129   : > { %v309_v23 = vmul.f32 %v435_v9, %v308_v16  ;;  %327 = vst.msk [vmem:[%s529_s15 + $0x30] sm:$0xff] %vm128_vm0, %v305_v21 }
 0x12a   : > { %325 = vst.msk [vmem:[%s529_s15 + $0x20] sm:$0xff] %vm128_vm0, %v275_v24 }
 0x12b   : > { %v310_v25 = vadd.f32 %v435_v9, %v309_v23 }
 0x12d   : > { %v314_v27 = vsel %vm313_vm1, %v435_v9, %v310_v25 }
 0x12e   : > { %v319_v28 = vsel %vm316_vm2, %v318_v26, %v314_v27 }
 0x12f   : > { %v320_v29 = vmul.f32 %v506_v54, %v319_v28 }
 0x131   : > { %328 = vst.msk [vmem:[%s529_s15 + $0x38] sm:$0xff] %vm128_vm0, %v320_v29 }
 0x132 PF: > { %s11_s6 = sadd.s32 1, %s442_s6  }
 0x133   : > { %p8_p4 = scmp.ge.s32.totalorder %s11_s6, 4  }
 0x135   :  { %10 = sbr.rel (!%p8_p4) target bundleno = 1 (0x1), region = 54 }

</bundles_post_ra>
